<compile_context>
chip_gen: v6e
topology: v6e:2x2x1
jax: 0.10.0
libtpu: 0.0.40
codegen_flags: <defaults>
</compile_context>

<pallas_src>
import jax
import jax.numpy as jnp
from jax.experimental import pallas as pl
from jax.experimental.pallas import tpu as pltpu


def _make_normalize_kernel(mean, inv_std):
    """Kernel with mean / 1/std baked in as trace-time constants."""

    def kernel(x_ref, o_ref):
        xv = x_ref[...].astype(jnp.float32)
        o_ref[...] = ((xv - mean) * inv_std).astype(o_ref.dtype)

    return kernel


# ~2 MiB blocks: with double-buffered input + output this is ~8 MiB resident,
# safe for v5e's 16 MiB default scoped VMEM and well within v6e / v7x budgets.
_TARGET_BLOCK_BYTES = 2 * 1024 * 1024


def _run_2d(x2d, mean, inv_std):
    rows, cols = x2d.shape
    itemsize = jnp.dtype(x2d.dtype).itemsize

    # Rows per block: target ~2 MiB, sublane count a multiple of 8
    # (covers f32; also fine for bf16 packing since 8 | 16-row pairs land ok).
    tm = _TARGET_BLOCK_BYTES // max(1, cols * itemsize)
    tm = max(8, (tm // 8) * 8)
    if tm >= rows:
        tm = rows  # full-extent block along rows is always legal

    grid = (pl.cdiv(rows, tm),)

    return pl.pallas_call(
        _make_normalize_kernel(mean, inv_std),
        out_shape=jax.ShapeDtypeStruct((rows, cols), x2d.dtype),
        grid=grid,
        in_specs=[pl.BlockSpec((tm, cols), lambda i: (i, 0))],
        out_specs=pl.BlockSpec((tm, cols), lambda i: (i, 0)),
        compiler_params=pltpu.CompilerParams(
            dimension_semantics=("parallel",)
        ),
    )(x2d)


def normalize(x, mean, std):
    """(x - mean) / std via a Pallas TPU kernel. mean/std are Python scalars."""
    mean = float(mean)
    inv_std = 1.0 / float(std)

    orig_shape = x.shape
    n = x.size
    if n == 0:
        return x

    # Prefer a lane-dense slab: flatten and re-tile with a wide, 128-multiple
    # last dim so every store is a full-lane unmasked vst.
    lanes = None
    for c in (2048, 1024, 512, 256, 128):
        if n % c == 0:
            lanes = c
            break

    if lanes is not None:
        x2d = x.reshape(-1, lanes)  # free reshape: no HBM copy, no padding
    else:
        # Fallback for totals not divisible by 128: keep the natural last dim
        # and let Pallas mask the edge blocks (still no padded HBM copy).
        cols = orig_shape[-1] if x.ndim >= 1 else 1
        x2d = x.reshape(-1, cols)

    out2d = _run_2d(x2d, mean, inv_std)
    return out2d.reshape(orig_shape)


class NormalizePallas:
    """Mirror of the PyTorch Normalize module."""

    def __init__(self, mean, std):
        self.mean = float(mean)
        self.std = float(std)

    def __call__(self, x):
        return normalize(x, self.mean, self.std)


if __name__ == "__main__":
    key = jax.random.PRNGKey(0)
    seq, batch, hidden = 8, 2, 32
    x = jax.random.normal(key, (seq, batch, hidden), dtype=jnp.float32)

    # deterministic "parameters" (mean/std scalars from __init__)
    mean, std = 0.5, 2.0
    mod = NormalizePallas(mean, std)

    # f32 path
    out = jax.block_until_ready(mod(x))
    ref = (x - mean) / std
    assert out.shape == x.shape and out.dtype == x.dtype
    assert jnp.allclose(out, ref, atol=1e-6, rtol=1e-6)

    # bf16 path (exercises the explicit output-dtype cast)
    x_bf = x.astype(jnp.bfloat16)
    out_bf = jax.block_until_ready(mod(x_bf))
    ref_bf = ((x_bf.astype(jnp.float32) - mean) / std).astype(jnp.bfloat16)
    assert out_bf.shape == x_bf.shape and out_bf.dtype == jnp.bfloat16
    assert jnp.allclose(
        out_bf.astype(jnp.float32), ref_bf.astype(jnp.float32),
        atol=1e-2, rtol=1e-2,
    )

    print("KERNEL_OK")
</pallas_src>

<mosaic_0001>
module attributes {stable_mosaic.version = 11 : i64} {
  func.func @kernel(%arg0: i32, %arg1: memref<1x512xf32, #tpu.memory_space<vmem>>, %arg2: memref<1x512xf32, #tpu.memory_space<vmem>>) attributes {dimension_semantics = [#tpu.dimension_semantics<parallel>], iteration_bounds = array<i64: 1>, scalar_prefetch = 0 : i64, scratch_operands = 0 : i64, tpu.core_type = #tpu.core_type<tc>, window_params = [{transform_indices = @transform_0, window_bounds = array<i64: 1, 512>}, {transform_indices = @transform_1, window_bounds = array<i64: 1, 512>}]} {
    %c0 = arith.constant 0 : index
    %c0_0 = arith.constant 0 : index
    %0 = vector.load %arg1[%c0, %c0_0] : memref<1x512xf32, #tpu.memory_space<vmem>>, vector<1x512xf32>
    %cst = arith.constant 5.000000e-01 : f32
    %1 = vector.broadcast %cst : f32 to vector<1x512xf32>
    %2 = arith.subf %0, %1 : vector<1x512xf32>
    %cst_1 = arith.constant 5.000000e-01 : f32
    %3 = vector.broadcast %cst_1 : f32 to vector<1x512xf32>
    %4 = arith.mulf %2, %3 : vector<1x512xf32>
    %c0_2 = arith.constant 0 : index
    %c0_3 = arith.constant 0 : index
    %5 = vector.load %arg2[%c0_2, %c0_3] : memref<1x512xf32, #tpu.memory_space<vmem>>, vector<1x512xf32>
    tpu.vector_store %arg2[%c0_2, %c0_3], %4 {strides = array<i32>} : memref<1x512xf32, #tpu.memory_space<vmem>>, vector<1x512xf32>,
    return
  }
  func.func @transform_0(%arg0: i32) -> (i32, i32) {
    %c0_i32 = arith.constant 0 : i32
    %c0_i32_0 = arith.constant 0 : i32
    return %arg0, %c0_i32 : i32, i32
  }
  func.func @transform_1(%arg0: i32) -> (i32, i32) {
    %c0_i32 = arith.constant 0 : i32
    %c0_i32_0 = arith.constant 0 : i32
    return %arg0, %c0_i32 : i32, i32
  }
}

</mosaic_0001>

<bundles_post_ra>
// kernel: tpu_custom_call.1
= control target key start
LH: loop header
LB: loop body
LE: loop exit
PB: predicated region body
PF: predicated region fallthrough
CT: control target
= control target key end

     0   :  { %6 = vsyncpa [#allocation3], 0  ;;  %s109_s0 = inlined_call_operand.hbm [shape: f32[1,512], index: 0, kind: input, shape index: {}]   ;;  %s110_s1 = inlined_call_operand.hbm [shape: f32[1,512], index: 1, kind: output, shape index: {}]  }
   0x1   :  { %7 = vsyncpa [#allocation4], 0  ;;  %s91_s6 = smov [#allocation2]  }
   0x2   :  { %s14_s7 = sshll.u32 %s91_s6, 4  ;;  %s15_s7 = int_to_ptr.vmem [resolvable:$true] %s14_s7 }
   0x3   :  { %s55_s8 = scalar_lea.vmem %s15_s7, 64  ;;  %p60_p1 = scmp.lt.s32.totalorder %s15_s7, %s15_s7 }
   0x4   :  { %p56_p0 = scmp.ne.s32.totalorder %s15_s7, %s55_s8  ;;  %p61_p2 = scmp.lt.s32.totalorder %s55_s8, %s55_s8 }
   0x6   :  { %p62_p3 = por %p61_p2, %p60_p1 }
   0x8   :  { %p63_p4 = pnand %p62_p3, %p56_p0 }
   0xa   :  { %66 = shalt.err (!%p63_p4)
}
   0xb   :  { %17 = dma.hbm_to_vmem [thread:$0]  %s109_s0, 64, %s15_s7, [#allocation3]  }
   0xc   :  { %87 = dma.done.wait [#allocation3], 64  }
   0xd   :  { %88 = vsyncadd [#allocation3], 4294967232  ;;  %v24_v0 = vlaneseq  ;;  %v21_v1 = vld [vmem:[#allocation2] sm:$0xf]  ;;  %s92_s11 = smov [#allocation5]  }
   0xe   :  { %s35_s12 = sshll.u32 %s92_s11, 4  ;;  %v44_v2 = vadd.f32 -0.5, %v21_v1  ;;  %s36_s12 = int_to_ptr.vmem [resolvable:$true] %s35_s12 }
   0xf   :  { %vm26_vm0 = vcmp.lt.s32.totalorder %v24_v0, 512  ;;  %s67_s13 = scalar_lea.vmem %s36_s12, 64  ;;  %p72_p6 = scmp.lt.s32.totalorder %s36_s12, %s36_s12 }
  0x10   :  { %v23_v3 = vmul.f32 0.5, %v44_v2  ;;  %p68_p5 = scmp.ne.s32.totalorder %s36_s12, %s67_s13  ;;  %p73_p7 = scmp.lt.s32.totalorder %s67_s13, %s67_s13 }
  0x12   :  { %28 = vst.msk [vmem:[#allocation5] sm:$0xf] %vm26_vm0, %v23_v3  ;;  %p74_p8 = por %p73_p7, %p72_p6 }
  0x14   :  { %p75_p9 = pnand %p74_p8, %p68_p5 }
  0x16   :  { %78 = shalt.err (!%p75_p9)
}
  0x17   :  { %38 = dma.vmem_to_hbm [thread:$0]  %s36_s12, 64, %s110_s1, [#allocation4]  }
  0x18   :  { %89 = dma.done.wait [#allocation4], 64  }
  0x19   :  { %90 = vsyncadd [#allocation4], 4294967232 }
  0x1a   :  { %42 = vsyncpa [#allocation3], 1 }
  0x1b   :  { %43 = vsyncpa [#allocation4], 1 }

</bundles_post_ra>
